<compile_context>
chip_gen: v5e
topology: v5e:2x2
jax: 0.10.0
libtpu: 0.0.40
codegen_flags: <defaults>
</compile_context>

<pallas_src>
import functools

import jax
import jax.numpy as jnp
from jax.experimental import pallas as pl
from jax.experimental.pallas import tpu as pltpu


def _basic_block_kernel(x_ref, w1_ref, b1_ref, w2_ref, b2_ref, o_ref,
                        xs_ref, patch_ref, *, width, margin, batch_tile):
    """Fused conv1+bn1+relu1 -> conv2+bn2 -> add(identity) -> relu.

    x_ref:     (Nb, C, H*W)              f32   activations, pixels on lanes
    w1_ref:    (C, 9*C)                  bf16  conv1 weight, bn1 scale folded
    b1_ref:    (C, 1)                    f32   folded bn1 bias
    w2_ref:    (C, 9*C)                  bf16  conv2 weight, bn2 scale folded
    b2_ref:    (C, 1)                    f32   folded bn2 bias
    o_ref:     (Nb, C, H*W)              f32
    xs_ref:    (Nb, C, H*W + 2*margin)   f32   zero-margined flat row buffer
    patch_ref: (9*C, Nb*H*W)             bf16  im2col patch matrix
    """
    nb = batch_tile
    C = x_ref.shape[1]
    HW = x_ref.shape[2]
    W = width

    # Zero only the halo margins; the interior is fully overwritten before any
    # read.  Re-done every grid step so correctness holds when the batch grid
    # is sharded across TensorCores ("parallel") and this core never ran a
    # hypothetical "first" step.
    xs_ref[:, :, :margin] = jnp.zeros((nb, C, margin), jnp.float32)
    xs_ref[:, :, margin + HW:] = jnp.zeros((nb, C, margin), jnp.float32)

    # In-kernel SAME-padding masks, dw=+/-1 taps only: the zero margins
    # (margin >= W+1) already cover the dh=+/-1 out-of-range rows, and dw=0
    # taps need no masking at all.
    col = jax.lax.broadcasted_iota(jnp.int32, (1, HW), 1) % W
    left_ok = (col > 0).astype(jnp.float32)         # valid source for dw = -1
    right_ok = (col < W - 1).astype(jnp.float32)    # valid source for dw = +1

    def im2col_dot(w_ref, b_ref):
        # xs_ref interior already holds this stage's f32 activation.
        # Assemble the (9*C, nb*HW) bf16 patch matrix from 9 lane-shifted
        # reads of the zero-margined buffer; cast to bf16 at the store.
        t = 0
        for dh in (-1, 0, 1):
            for dw in (-1, 0, 1):
                start = margin + dh * W + dw
                for b in range(nb):
                    tap = xs_ref[b, :, start:start + HW]
                    if dw == -1:
                        tap = tap * left_ok         # f32 multiply (v5e-safe)
                    elif dw == 1:
                        tap = tap * right_ok
                    patch_ref[t * C:(t + 1) * C, b * HW:(b + 1) * HW] = (
                        tap.astype(jnp.bfloat16))
                t += 1
        # Single MXU call per conv stage: bf16 operands, f32 accumulation.
        acc = jnp.dot(w_ref[...], patch_ref[...],
                      preferred_element_type=jnp.float32)
        return acc + b_ref[...]                     # folded BN bias, (C,1)

    # Stage the input activation into the margined buffer.
    for b in range(nb):
        xs_ref[b, :, margin:margin + HW] = x_ref[b].astype(jnp.float32)

    # conv1 + bn1 + relu1, written straight back into the staging buffer so
    # the intermediate activation needs no extra VMEM round trip.
    h = jnp.maximum(im2col_dot(w1_ref, b1_ref), 0.0)        # (C, nb*HW) f32
    for b in range(nb):
        xs_ref[b, :, margin:margin + HW] = h[:, b * HW:(b + 1) * HW]

    # conv2 + bn2 + identity + relu; the identity is re-read from the resident
    # input block so no large f32 temporary stays live across both stages.
    y = im2col_dot(w2_ref, b2_ref)                          # (C, nb*HW) f32
    for b in range(nb):
        o_ref[b] = jnp.maximum(
            y[:, b * HW:(b + 1) * HW] + x_ref[b].astype(jnp.float32),
            0.0).astype(o_ref.dtype)


def _fold_bn(gamma, beta, mean, var, eps=1e-5):
    scale = gamma / jnp.sqrt(var + eps)
    bias = beta - mean * scale
    return scale, bias


def _fold_conv_weight(w_oihw, scale):
    """OIHW (Cout,Cin,3,3) weight * per-Cout BN scale -> (Cout, 9*Cin) bf16.

    Column order is (kh, kw, cin) with cin minor, matching the tap order the
    kernel uses to assemble the im2col patch matrix.
    """
    cout, cin = w_oihw.shape[0], w_oihw.shape[1]
    w = w_oihw * scale[:, None, None, None]
    w = jnp.transpose(w, (0, 2, 3, 1)).reshape(cout, 9 * cin)
    return w.astype(jnp.bfloat16)


def _pick_batch_tile(n, c, hw):
    """Largest divisor of n that keeps >=2 grid steps when n >= 2 (so both
    v7x TensorCores get work) and keeps the bf16 patch scratch <= ~8 MiB."""
    best = 1
    for nb in range(1, n + 1):
        if n % nb:
            continue
        if n >= 2 and n // nb < 2:
            continue
        if 9 * c * nb * hw * 2 > 8 * 1024 * 1024:
            continue
        best = nb
    return best


def basic_block_forward(x_nchw, params, *, batch_tile=None):
    """BasicBlock.forward (stride=1, downsample=None), eval-mode BatchNorm."""
    N, C, H, W = x_nchw.shape
    HW = H * W
    assert params["conv1_w"].shape[0] == C and params["conv1_w"].shape[1] == C, \
        "stride-1 / no-downsample BasicBlock requires inplanes == planes"

    if batch_tile is None:
        batch_tile = _pick_batch_tile(N, C, HW)
    Nb = batch_tile
    assert N % Nb == 0, "batch_tile must divide the batch size"

    s1, b1 = _fold_bn(params["bn1_gamma"], params["bn1_beta"],
                      params["bn1_mean"], params["bn1_var"])
    s2, b2 = _fold_bn(params["bn2_gamma"], params["bn2_beta"],
                      params["bn2_mean"], params["bn2_var"])
    w1 = _fold_conv_weight(params["conv1_w"], s1)          # (C, 9C) bf16
    w2 = _fold_conv_weight(params["conv2_w"], s2)          # (C, 9C) bf16
    b1 = b1.reshape(C, 1).astype(jnp.float32)
    b2 = b2.reshape(C, 1).astype(jnp.float32)

    # Free reshape: NCHW is already pixel-minor, so (N, C, H*W) is lane-dense.
    x3 = x_nchw.reshape(N, C, HW)

    # 128-aligned halo margin per side; must stay >= W+1 so the dh=+/-1 taps
    # always land in zeros (this is what lets us drop the row masks).
    margin = pl.cdiv(W + 1, 128) * 128
    full2 = lambda n: (0, 0)

    out3 = pl.pallas_call(
        functools.partial(_basic_block_kernel, width=W, margin=margin,
                          batch_tile=Nb),
        out_shape=jax.ShapeDtypeStruct((N, C, HW), x_nchw.dtype),
        grid=(N // Nb,),
        in_specs=[
            pl.BlockSpec((Nb, C, HW), lambda n: (n, 0, 0)),   # activation
            pl.BlockSpec((C, 9 * C), full2),                  # conv1 weight
            pl.BlockSpec((C, 1), full2),                      # bn1 bias
            pl.BlockSpec((C, 9 * C), full2),                  # conv2 weight
            pl.BlockSpec((C, 1), full2),                      # bn2 bias
        ],
        out_specs=pl.BlockSpec((Nb, C, HW), lambda n: (n, 0, 0)),
        scratch_shapes=[
            pltpu.VMEM((Nb, C, HW + 2 * margin), jnp.float32),  # margined rows
            pltpu.VMEM((9 * C, Nb * HW), jnp.bfloat16),         # im2col (bf16)
        ],
        compiler_params=pltpu.CompilerParams(
            dimension_semantics=("parallel",),
            # Safe on every generation: above v5e's 16 MiB scoped default and
            # inside v7x's 64 MiB physical VMEM per TensorCore.
            vmem_limit_bytes=32 * 1024 * 1024,
        ),
    )(x3, w1, b1, w2, b2)

    return out3.reshape(N, C, H, W)


def _reference_forward(x_nchw, params):
    """Pure-JAX reference mirroring the kernel's bf16-MXU / f32-accum math."""
    dn = ("NCHW", "OIHW", "NCHW")
    s1, b1 = _fold_bn(params["bn1_gamma"], params["bn1_beta"],
                      params["bn1_mean"], params["bn1_var"])
    s2, b2 = _fold_bn(params["bn2_gamma"], params["bn2_beta"],
                      params["bn2_mean"], params["bn2_var"])
    w1 = (params["conv1_w"] * s1[:, None, None, None]).astype(jnp.bfloat16)
    w2 = (params["conv2_w"] * s2[:, None, None, None]).astype(jnp.bfloat16)

    def conv(inp, w):
        return jax.lax.conv_general_dilated(
            inp.astype(jnp.bfloat16), w, (1, 1), "SAME",
            dimension_numbers=dn, preferred_element_type=jnp.float32)

    h = jnp.maximum(conv(x_nchw, w1) + b1[None, :, None, None], 0.0)
    y = conv(h, w2) + b2[None, :, None, None] + x_nchw
    return jnp.maximum(y, 0.0)


if __name__ == "__main__":
    key = jax.random.PRNGKey(0)
    N, C, H, W = 2, 4, 16, 16              # inplanes = planes = 4, stride = 1

    ks = jax.random.split(key, 8)
    x = jax.random.normal(ks[0], (N, C, H, W), jnp.float32)
    params = {
        "conv1_w": jax.random.normal(ks[1], (C, C, 3, 3), jnp.float32) * 0.1,
        "conv2_w": jax.random.normal(ks[2], (C, C, 3, 3), jnp.float32) * 0.1,
        "bn1_gamma": 1.0 + 0.1 * jax.random.normal(ks[3], (C,), jnp.float32),
        "bn1_beta": 0.1 * jax.random.normal(ks[4], (C,), jnp.float32),
        "bn1_mean": 0.05 * jax.random.normal(ks[5], (C,), jnp.float32),
        "bn1_var": jnp.abs(1.0 + 0.1 * jax.random.normal(ks[6], (C,), jnp.float32)),
        "bn2_gamma": 1.0 + 0.1 * jax.random.normal(ks[7], (C,), jnp.float32),
        "bn2_beta": jnp.linspace(-0.1, 0.1, C, dtype=jnp.float32),
        "bn2_mean": jnp.linspace(-0.05, 0.05, C, dtype=jnp.float32),
        "bn2_var": jnp.linspace(0.9, 1.1, C, dtype=jnp.float32),
    }

    ref = jax.block_until_ready(_reference_forward(x, params))

    # Default batch_tile (keeps 2 grid steps -> both v7x TensorCores busy).
    out = jax.block_until_ready(basic_block_forward(x, params))
    assert out.shape == (N, C, H, W)
    err = float(jnp.max(jnp.abs(out - ref)))
    assert err < 2e-3, f"mismatch vs JAX reference (batch_tile=auto): {err}"

    # Batch-tiled path: both images packed into one grid step / one MXU dot
    # per conv stage (the amortization path for small layers).
    out2 = jax.block_until_ready(basic_block_forward(x, params, batch_tile=2))
    err2 = float(jnp.max(jnp.abs(out2 - ref)))
    assert err2 < 2e-3, f"mismatch vs JAX reference (batch_tile=2): {err2}"

    print("KERNEL_OK")
</pallas_src>

<mosaic_0001>
module attributes {stable_mosaic.version = 11 : i64} {
  func.func @_basic_block_kernel(%arg0: i32, %arg1: memref<1x4x256xf32, #tpu.memory_space<vmem>>, %arg2: memref<4x36xbf16, #tpu.memory_space<vmem>>, %arg3: memref<4x1xf32, #tpu.memory_space<vmem>>, %arg4: memref<4x36xbf16, #tpu.memory_space<vmem>>, %arg5: memref<4x1xf32, #tpu.memory_space<vmem>>, %arg6: memref<1x4x256xf32, #tpu.memory_space<vmem>>, %arg7: memref<1x4x512xf32, #tpu.memory_space<vmem>>, %arg8: memref<36x256xbf16, #tpu.memory_space<vmem>>) attributes {dimension_semantics = [#tpu.dimension_semantics<parallel>], iteration_bounds = array<i64: 2>, scalar_prefetch = 0 : i64, scratch_operands = 2 : i64, tpu.core_type = #tpu.core_type<tc>, window_params = [{transform_indices = @transform_0, window_bounds = array<i64: 1, 4, 256>}, {pipeline_mode = #tpu.pipeline_mode<synchronous>, transform_indices = @transform_1, window_bounds = array<i64: 4, 36>}, {pipeline_mode = #tpu.pipeline_mode<synchronous>, transform_indices = @transform_2, window_bounds = array<i64: 4, 1>}, {pipeline_mode = #tpu.pipeline_mode<synchronous>, transform_indices = @transform_3, window_bounds = array<i64: 4, 36>}, {pipeline_mode = #tpu.pipeline_mode<synchronous>, transform_indices = @transform_4, window_bounds = array<i64: 4, 1>}, {transform_indices = @transform_5, window_bounds = array<i64: 1, 4, 256>}]} {
    %cst = arith.constant 0.000000e+00 : f32
    %0 = vector.broadcast %cst : f32 to vector<1x4x128xf32>
    %c0 = arith.constant 0 : index
    %c0_0 = arith.constant 0 : index
    %c0_1 = arith.constant 0 : index
    %1 = vector.load %arg7[%c0, %c0_0, %c0_1] : memref<1x4x512xf32, #tpu.memory_space<vmem>>, vector<1x4x128xf32>
    tpu.vector_store %arg7[%c0, %c0_0, %c0_1], %0 {strides = array<i32>} : memref<1x4x512xf32, #tpu.memory_space<vmem>>, vector<1x4x128xf32>,
    %cst_2 = arith.constant 0.000000e+00 : f32
    %2 = vector.broadcast %cst_2 : f32 to vector<1x4x128xf32>
    %c0_3 = arith.constant 0 : index
    %c0_4 = arith.constant 0 : index
    %c384 = arith.constant 384 : index
    %3 = vector.load %arg7[%c0_3, %c0_4, %c384] : memref<1x4x512xf32, #tpu.memory_space<vmem>>, vector<1x4x128xf32>
    tpu.vector_store %arg7[%c0_3, %c0_4, %c384], %2 {strides = array<i32>} : memref<1x4x512xf32, #tpu.memory_space<vmem>>, vector<1x4x128xf32>,
    %4 = tpu.iota {dimensions = array<i32: 1>} : vector<1x256xi32>
    %c16_i32 = arith.constant 16 : i32
    %c0_i32 = arith.constant 0 : i32
    %5 = arith.cmpi eq, %c16_i32, %c0_i32 : i32
    %c1_i32 = arith.constant 1 : i32
    %6 = arith.select %5, %c1_i32, %c16_i32 : i32
    %7 = vector.broadcast %6 : i32 to vector<1x256xi32>
    %8 = arith.remsi %4, %7 : vector<1x256xi32>
    %c0_i32_5 = arith.constant 0 : i32
    %9 = vector.broadcast %c0_i32_5 : i32 to vector<1x256xi32>
    %10 = arith.cmpi ne, %8, %9 : vector<1x256xi32>
    %c0_i32_6 = arith.constant 0 : i32
    %11 = vector.broadcast %c0_i32_6 : i32 to vector<1x256xi32>
    %12 = arith.cmpi slt, %8, %11 : vector<1x256xi32>
    %c0_i32_7 = arith.constant 0 : i32
    %13 = arith.cmpi slt, %6, %c0_i32_7 : i32
    %14 = vector.broadcast %13 : i1 to vector<1x256xi1>
    %15 = vector.broadcast %14 : vector<1x256xi1> to vector<1x256xi1>
    %16 = arith.xori %12, %15 : vector<1x256xi1>
    %17 = arith.andi %16, %10 : vector<1x256xi1>
    %18 = vector.broadcast %6 : i32 to vector<1x256xi32>
    %19 = arith.addi %8, %18 : vector<1x256xi32>
    %20 = arith.select %17, %19, %8 : vector<1x256xi1>, vector<1x256xi32>
    %c0_i32_8 = arith.constant 0 : i32
    %21 = vector.broadcast %c0_i32_8 : i32 to vector<1x256xi32>
    %22 = arith.cmpi sgt, %20, %21 : vector<1x256xi32>
    %23 = arith.extui %22 : vector<1x256xi1> to vector<1x256xi32>
    %24 = arith.sitofp %23 : vector<1x256xi32> to vector<1x256xf32>
    %c15_i32 = arith.constant 15 : i32
    %25 = vector.broadcast %c15_i32 : i32 to vector<1x256xi32>
    %26 = arith.cmpi slt, %20, %25 : vector<1x256xi32>
    %27 = arith.extui %26 : vector<1x256xi1> to vector<1x256xi32>
    %28 = arith.sitofp %27 : vector<1x256xi32> to vector<1x256xf32>
    %c0_9 = arith.constant 0 : index
    %c0_10 = arith.constant 0 : index
    %c0_11 = arith.constant 0 : index
    %29 = vector.load %arg1[%c0_9, %c0_10, %c0_11] : memref<1x4x256xf32, #tpu.memory_space<vmem>>, vector<1x4x256xf32>
    %30 = vector.shape_cast %29 : vector<1x4x256xf32> to vector<4x256xf32>
    %c0_12 = arith.constant 0 : index
    %c0_13 = arith.constant 0 : index
    %c128 = arith.constant 128 : index
    %31 = vector.load %arg7[%c0_12, %c0_13, %c128] : memref<1x4x512xf32, #tpu.memory_space<vmem>>, vector<1x4x256xf32>
    %32 = vector.shape_cast %31 : vector<1x4x256xf32> to vector<4x256xf32>
    %33 = vector.shape_cast %30 : vector<4x256xf32> to vector<1x4x256xf32>
    tpu.vector_store %arg7[%c0_12, %c0_13, %c128], %33 {strides = array<i32>} : memref<1x4x512xf32, #tpu.memory_space<vmem>>, vector<1x4x256xf32>,
    %c0_14 = arith.constant 0 : index
    %c0_15 = arith.constant 0 : index
    %c111 = arith.constant 111 : index
    %34 = vector.load %arg7[%c0_14, %c0_15, %c111] : memref<1x4x512xf32, #tpu.memory_space<vmem>>, vector<1x4x256xf32>
    %35 = vector.shape_cast %34 : vector<1x4x256xf32> to vector<4x256xf32>
    %36 = vector.broadcast %24 : vector<1x256xf32> to vector<4x256xf32>
    %37 = arith.mulf %35, %36 : vector<4x256xf32>
    %38 = arith.truncf %37 : vector<4x256xf32> to vector<4x256xbf16>
    %c0_16 = arith.constant 0 : index
    %c0_17 = arith.constant 0 : index
    %39 = vector.load %arg8[%c0_16, %c0_17] : memref<36x256xbf16, #tpu.memory_space<vmem>>, vector<4x256xbf16>
    tpu.vector_store %arg8[%c0_16, %c0_17], %38 {strides = array<i32>} : memref<36x256xbf16, #tpu.memory_space<vmem>>, vector<4x256xbf16>,
    %c0_18 = arith.constant 0 : index
    %c0_19 = arith.constant 0 : index
    %c112 = arith.constant 112 : index
    %40 = vector.load %arg7[%c0_18, %c0_19, %c112] : memref<1x4x512xf32, #tpu.memory_space<vmem>>, vector<1x4x256xf32>
    %41 = vector.shape_cast %40 : vector<1x4x256xf32> to vector<4x256xf32>
    %42 = arith.truncf %41 : vector<4x256xf32> to vector<4x256xbf16>
    %c4 = arith.constant 4 : index
    %c0_20 = arith.constant 0 : index
    %43 = vector.load %arg8[%c4, %c0_20] : memref<36x256xbf16, #tpu.memory_space<vmem>>, vector<4x256xbf16>
    tpu.vector_store %arg8[%c4, %c0_20], %42 {strides = array<i32>} : memref<36x256xbf16, #tpu.memory_space<vmem>>, vector<4x256xbf16>,
    %c0_21 = arith.constant 0 : index
    %c0_22 = arith.constant 0 : index
    %c113 = arith.constant 113 : index
    %44 = vector.load %arg7[%c0_21, %c0_22, %c113] : memref<1x4x512xf32, #tpu.memory_space<vmem>>, vector<1x4x256xf32>
    %45 = vector.shape_cast %44 : vector<1x4x256xf32> to vector<4x256xf32>
    %46 = vector.broadcast %28 : vector<1x256xf32> to vector<4x256xf32>
    %47 = arith.mulf %45, %46 : vector<4x256xf32>
    %48 = arith.truncf %47 : vector<4x256xf32> to vector<4x256xbf16>
    %c8 = arith.constant 8 : index
    %c0_23 = arith.constant 0 : index
    %49 = vector.load %arg8[%c8, %c0_23] : memref<36x256xbf16, #tpu.memory_space<vmem>>, vector<4x256xbf16>
    tpu.vector_store %arg8[%c8, %c0_23], %48 {strides = array<i32>} : memref<36x256xbf16, #tpu.memory_space<vmem>>, vector<4x256xbf16>,
    %c0_24 = arith.constant 0 : index
    %c0_25 = arith.constant 0 : index
    %c127 = arith.constant 127 : index
    %50 = vector.load %arg7[%c0_24, %c0_25, %c127] : memref<1x4x512xf32, #tpu.memory_space<vmem>>, vector<1x4x256xf32>
    %51 = vector.shape_cast %50 : vector<1x4x256xf32> to vector<4x256xf32>
    %52 = vector.broadcast %24 : vector<1x256xf32> to vector<4x256xf32>
    %53 = arith.mulf %51, %52 : vector<4x256xf32>
    %54 = arith.truncf %53 : vector<4x256xf32> to vector<4x256xbf16>
    %c12 = arith.constant 12 : index
    %c0_26 = arith.constant 0 : index
    %55 = vector.load %arg8[%c12, %c0_26] : memref<36x256xbf16, #tpu.memory_space<vmem>>, vector<4x256xbf16>
    tpu.vector_store %arg8[%c12, %c0_26], %54 {strides = array<i32>} : memref<36x256xbf16, #tpu.memory_space<vmem>>, vector<4x256xbf16>,
    %c0_27 = arith.constant 0 : index
    %c0_28 = arith.constant 0 : index
    %c128_29 = arith.constant 128 : index
    %56 = vector.load %arg7[%c0_27, %c0_28, %c128_29] : memref<1x4x512xf32, #tpu.memory_space<vmem>>, vector<1x4x256xf32>
    %57 = vector.shape_cast %56 : vector<1x4x256xf32> to vector<4x256xf32>
    %58 = arith.truncf %57 : vector<4x256xf32> to vector<4x256xbf16>
    %c16 = arith.constant 16 : index
    %c0_30 = arith.constant 0 : index
    %59 = vector.load %arg8[%c16, %c0_30] : memref<36x256xbf16, #tpu.memory_space<vmem>>, vector<4x256xbf16>
    tpu.vector_store %arg8[%c16, %c0_30], %58 {strides = array<i32>} : memref<36x256xbf16, #tpu.memory_space<vmem>>, vector<4x256xbf16>,
    %c0_31 = arith.constant 0 : index
    %c0_32 = arith.constant 0 : index
    %c129 = arith.constant 129 : index
    %60 = vector.load %arg7[%c0_31, %c0_32, %c129] : memref<1x4x512xf32, #tpu.memory_space<vmem>>, vector<1x4x256xf32>
    %61 = vector.shape_cast %60 : vector<1x4x256xf32> to vector<4x256xf32>
    %62 = vector.broadcast %28 : vector<1x256xf32> to vector<4x256xf32>
    %63 = arith.mulf %61, %62 : vector<4x256xf32>
    %64 = arith.truncf %63 : vector<4x256xf32> to vector<4x256xbf16>
    %c20 = arith.constant 20 : index
    %c0_33 = arith.constant 0 : index
    %65 = vector.load %arg8[%c20, %c0_33] : memref<36x256xbf16, #tpu.memory_space<vmem>>, vector<4x256xbf16>
    tpu.vector_store %arg8[%c20, %c0_33], %64 {strides = array<i32>} : memref<36x256xbf16, #tpu.memory_space<vmem>>, vector<4x256xbf16>,
    %c0_34 = arith.constant 0 : index
    %c0_35 = arith.constant 0 : index
    %c143 = arith.constant 143 : index
    %66 = vector.load %arg7[%c0_34, %c0_35, %c143] : memref<1x4x512xf32, #tpu.memory_space<vmem>>, vector<1x4x256xf32>
    %67 = vector.shape_cast %66 : vector<1x4x256xf32> to vector<4x256xf32>
    %68 = vector.broadcast %24 : vector<1x256xf32> to vector<4x256xf32>
    %69 = arith.mulf %67, %68 : vector<4x256xf32>
    %70 = arith.truncf %69 : vector<4x256xf32> to vector<4x256xbf16>
    %c24 = arith.constant 24 : index
    %c0_36 = arith.constant 0 : index
    %71 = vector.load %arg8[%c24, %c0_36] : memref<36x256xbf16, #tpu.memory_space<vmem>>, vector<4x256xbf16>
    tpu.vector_store %arg8[%c24, %c0_36], %70 {strides = array<i32>} : memref<36x256xbf16, #tpu.memory_space<vmem>>, vector<4x256xbf16>,
    %c0_37 = arith.constant 0 : index
    %c0_38 = arith.constant 0 : index
    %c144 = arith.constant 144 : index
    %72 = vector.load %arg7[%c0_37, %c0_38, %c144] : memref<1x4x512xf32, #tpu.memory_space<vmem>>, vector<1x4x256xf32>
    %73 = vector.shape_cast %72 : vector<1x4x256xf32> to vector<4x256xf32>
    %74 = arith.truncf %73 : vector<4x256xf32> to vector<4x256xbf16>
    %c28 = arith.constant 28 : index
    %c0_39 = arith.constant 0 : index
    %75 = vector.load %arg8[%c28, %c0_39] : memref<36x256xbf16, #tpu.memory_space<vmem>>, vector<4x256xbf16>
    tpu.vector_store %arg8[%c28, %c0_39], %74 {strides = array<i32>} : memref<36x256xbf16, #tpu.memory_space<vmem>>, vector<4x256xbf16>,
    %c0_40 = arith.constant 0 : index
    %c0_41 = arith.constant 0 : index
    %c145 = arith.constant 145 : index
    %76 = vector.load %arg7[%c0_40, %c0_41, %c145] : memref<1x4x512xf32, #tpu.memory_space<vmem>>, vector<1x4x256xf32>
    %77 = vector.shape_cast %76 : vector<1x4x256xf32> to vector<4x256xf32>
    %78 = vector.broadcast %28 : vector<1x256xf32> to vector<4x256xf32>
    %79 = arith.mulf %77, %78 : vector<4x256xf32>
    %80 = arith.truncf %79 : vector<4x256xf32> to vector<4x256xbf16>
    %c32 = arith.constant 32 : index
    %c0_42 = arith.constant 0 : index
    %81 = vector.load %arg8[%c32, %c0_42] : memref<36x256xbf16, #tpu.memory_space<vmem>>, vector<4x256xbf16>
    tpu.vector_store %arg8[%c32, %c0_42], %80 {strides = array<i32>} : memref<36x256xbf16, #tpu.memory_space<vmem>>, vector<4x256xbf16>,
    %c0_43 = arith.constant 0 : index
    %c0_44 = arith.constant 0 : index
    %82 = vector.load %arg2[%c0_43, %c0_44] : memref<4x36xbf16, #tpu.memory_space<vmem>>, vector<4x36xbf16>
    %c0_45 = arith.constant 0 : index
    %c0_46 = arith.constant 0 : index
    %83 = vector.load %arg8[%c0_45, %c0_46] : memref<36x256xbf16, #tpu.memory_space<vmem>>, vector<36x256xbf16>
    %cst_47 = arith.constant dense<0.000000e+00> : vector<4x256xf32>
    %84 = tpu.matmul %82, %83, %cst_47 {dimension_numbers = #tpu.dot_dimension_numbers<[1], [0], [0], [1], [0, 0, 1, 1], [], []>} : vector<4x36xbf16>, vector<36x256xbf16>, vector<4x256xf32> -> vector<4x256xf32>
    %c0_48 = arith.constant 0 : index
    %c0_49 = arith.constant 0 : index
    %85 = vector.load %arg3[%c0_48, %c0_49] : memref<4x1xf32, #tpu.memory_space<vmem>>, vector<4x1xf32>
    %86 = vector.broadcast %85 : vector<4x1xf32> to vector<4x256xf32>
    %87 = arith.addf %84, %86 : vector<4x256xf32>
    %cst_50 = arith.constant 0.000000e+00 : f32
    %88 = vector.broadcast %cst_50 : f32 to vector<4x256xf32>
    %89 = arith.maximumf %87, %88 : vector<4x256xf32>
    %c0_51 = arith.constant 0 : index
    %c0_52 = arith.constant 0 : index
    %c128_53 = arith.constant 128 : index
    %90 = vector.load %arg7[%c0_51, %c0_52, %c128_53] : memref<1x4x512xf32, #tpu.memory_space<vmem>>, vector<1x4x256xf32>
    %91 = vector.shape_cast %90 : vector<1x4x256xf32> to vector<4x256xf32>
    %92 = vector.shape_cast %89 : vector<4x256xf32> to vector<1x4x256xf32>
    tpu.vector_store %arg7[%c0_51, %c0_52, %c128_53], %92 {strides = array<i32>} : memref<1x4x512xf32, #tpu.memory_space<vmem>>, vector<1x4x256xf32>,
    %c0_54 = arith.constant 0 : index
    %c0_55 = arith.constant 0 : index
    %c111_56 = arith.constant 111 : index
    %93 = vector.load %arg7[%c0_54, %c0_55, %c111_56] : memref<1x4x512xf32, #tpu.memory_space<vmem>>, vector<1x4x256xf32>
    %94 = vector.shape_cast %93 : vector<1x4x256xf32> to vector<4x256xf32>
    %95 = vector.broadcast %24 : vector<1x256xf32> to vector<4x256xf32>
    %96 = arith.mulf %94, %95 : vector<4x256xf32>
    %97 = arith.truncf %96 : vector<4x256xf32> to vector<4x256xbf16>
    %c0_57 = arith.constant 0 : index
    %c0_58 = arith.constant 0 : index
    %98 = vector.load %arg8[%c0_57, %c0_58] : memref<36x256xbf16, #tpu.memory_space<vmem>>, vector<4x256xbf16>
    tpu.vector_store %arg8[%c0_57, %c0_58], %97 {strides = array<i32>} : memref<36x256xbf16, #tpu.memory_space<vmem>>, vector<4x256xbf16>,
    %c0_59 = arith.constant 0 : index
    %c0_60 = arith.constant 0 : index
    %c112_61 = arith.constant 112 : index
    %99 = vector.load %arg7[%c0_59, %c0_60, %c112_61] : memref<1x4x512xf32, #tpu.memory_space<vmem>>, vector<1x4x256xf32>
    %100 = vector.shape_cast %99 : vector<1x4x256xf32> to vector<4x256xf32>
    %101 = arith.truncf %100 : vector<4x256xf32> to vector<4x256xbf16>
    %c4_62 = arith.constant 4 : index
    %c0_63 = arith.constant 0 : index
    %102 = vector.load %arg8[%c4_62, %c0_63] : memref<36x256xbf16, #tpu.memory_space<vmem>>, vector<4x256xbf16>
    tpu.vector_store %arg8[%c4_62, %c0_63], %101 {strides = array<i32>} : memref<36x256xbf16, #tpu.memory_space<vmem>>, vector<4x256xbf16>,
    %c0_64 = arith.constant 0 : index
    %c0_65 = arith.constant 0 : index
    %c113_66 = arith.constant 113 : index
    %103 = vector.load %arg7[%c0_64, %c0_65, %c113_66] : memref<1x4x512xf32, #tpu.memory_space<vmem>>, vector<1x4x256xf32>
    %104 = vector.shape_cast %103 : vector<1x4x256xf32> to vector<4x256xf32>
    %105 = vector.broadcast %28 : vector<1x256xf32> to vector<4x256xf32>
    %106 = arith.mulf %104, %105 : vector<4x256xf32>
    %107 = arith.truncf %106 : vector<4x256xf32> to vector<4x256xbf16>
    %c8_67 = arith.constant 8 : index
    %c0_68 = arith.constant 0 : index
    %108 = vector.load %arg8[%c8_67, %c0_68] : memref<36x256xbf16, #tpu.memory_space<vmem>>, vector<4x256xbf16>
    tpu.vector_store %arg8[%c8_67, %c0_68], %107 {strides = array<i32>} : memref<36x256xbf16, #tpu.memory_space<vmem>>, vector<4x256xbf16>,
    %c0_69 = arith.constant 0 : index
    %c0_70 = arith.constant 0 : index
    %c127_71 = arith.constant 127 : index
    %109 = vector.load %arg7[%c0_69, %c0_70, %c127_71] : memref<1x4x512xf32, #tpu.memory_space<vmem>>, vector<1x4x256xf32>
    %110 = vector.shape_cast %109 : vector<1x4x256xf32> to vector<4x256xf32>
    %111 = vector.broadcast %24 : vector<1x256xf32> to vector<4x256xf32>
    %112 = arith.mulf %110, %111 : vector<4x256xf32>
    %113 = arith.truncf %112 : vector<4x256xf32> to vector<4x256xbf16>
    %c12_72 = arith.constant 12 : index
    %c0_73 = arith.constant 0 : index
    %114 = vector.load %arg8[%c12_72, %c0_73] : memref<36x256xbf16, #tpu.memory_space<vmem>>, vector<4x256xbf16>
    tpu.vector_store %arg8[%c12_72, %c0_73], %113 {strides = array<i32>} : memref<36x256xbf16, #tpu.memory_space<vmem>>, vector<4x256xbf16>,
    %c0_74 = arith.constant 0 : index
    %c0_75 = arith.constant 0 : index
    %c128_76 = arith.constant 128 : index
    %115 = vector.load %arg7[%c0_74, %c0_75, %c128_76] : memref<1x4x512xf32, #tpu.memory_space<vmem>>, vector<1x4x256xf32>
    %116 = vector.shape_cast %115 : vector<1x4x256xf32> to vector<4x256xf32>
    %117 = arith.truncf %116 : vector<4x256xf32> to vector<4x256xbf16>
    %c16_77 = arith.constant 16 : index
    %c0_78 = arith.constant 0 : index
    %118 = vector.load %arg8[%c16_77, %c0_78] : memref<36x256xbf16, #tpu.memory_space<vmem>>, vector<4x256xbf16>
    tpu.vector_store %arg8[%c16_77, %c0_78], %117 {strides = array<i32>} : memref<36x256xbf16, #tpu.memory_space<vmem>>, vector<4x256xbf16>,
    %c0_79 = arith.constant 0 : index
    %c0_80 = arith.constant 0 : index
    %c129_81 = arith.constant 129 : index
    %119 = vector.load %arg7[%c0_79, %c0_80, %c129_81] : memref<1x4x512xf32, #tpu.memory_space<vmem>>, vector<1x4x256xf32>
    %120 = vector.shape_cast %119 : vector<1x4x256xf32> to vector<4x256xf32>
    %121 = vector.broadcast %28 : vector<1x256xf32> to vector<4x256xf32>
    %122 = arith.mulf %120, %121 : vector<4x256xf32>
    %123 = arith.truncf %122 : vector<4x256xf32> to vector<4x256xbf16>
    %c20_82 = arith.constant 20 : index
    %c0_83 = arith.constant 0 : index
    %124 = vector.load %arg8[%c20_82, %c0_83] : memref<36x256xbf16, #tpu.memory_space<vmem>>, vector<4x256xbf16>
    tpu.vector_store %arg8[%c20_82, %c0_83], %123 {strides = array<i32>} : memref<36x256xbf16, #tpu.memory_space<vmem>>, vector<4x256xbf16>,
    %c0_84 = arith.constant 0 : index
    %c0_85 = arith.constant 0 : index
    %c143_86 = arith.constant 143 : index
    %125 = vector.load %arg7[%c0_84, %c0_85, %c143_86] : memref<1x4x512xf32, #tpu.memory_space<vmem>>, vector<1x4x256xf32>
    %126 = vector.shape_cast %125 : vector<1x4x256xf32> to vector<4x256xf32>
    %127 = vector.broadcast %24 : vector<1x256xf32> to vector<4x256xf32>
    %128 = arith.mulf %126, %127 : vector<4x256xf32>
    %129 = arith.truncf %128 : vector<4x256xf32> to vector<4x256xbf16>
    %c24_87 = arith.constant 24 : index
    %c0_88 = arith.constant 0 : index
    %130 = vector.load %arg8[%c24_87, %c0_88] : memref<36x256xbf16, #tpu.memory_space<vmem>>, vector<4x256xbf16>
    tpu.vector_store %arg8[%c24_87, %c0_88], %129 {strides = array<i32>} : memref<36x256xbf16, #tpu.memory_space<vmem>>, vector<4x256xbf16>,
    %c0_89 = arith.constant 0 : index
    %c0_90 = arith.constant 0 : index
    %c144_91 = arith.constant 144 : index
    %131 = vector.load %arg7[%c0_89, %c0_90, %c144_91] : memref<1x4x512xf32, #tpu.memory_space<vmem>>, vector<1x4x256xf32>
    %132 = vector.shape_cast %131 : vector<1x4x256xf32> to vector<4x256xf32>
    %133 = arith.truncf %132 : vector<4x256xf32> to vector<4x256xbf16>
    %c28_92 = arith.constant 28 : index
    %c0_93 = arith.constant 0 : index
    %134 = vector.load %arg8[%c28_92, %c0_93] : memref<36x256xbf16, #tpu.memory_space<vmem>>, vector<4x256xbf16>
    tpu.vector_store %arg8[%c28_92, %c0_93], %133 {strides = array<i32>} : memref<36x256xbf16, #tpu.memory_space<vmem>>, vector<4x256xbf16>,
    %c0_94 = arith.constant 0 : index
    %c0_95 = arith.constant 0 : index
    %c145_96 = arith.constant 145 : index
    %135 = vector.load %arg7[%c0_94, %c0_95, %c145_96] : memref<1x4x512xf32, #tpu.memory_space<vmem>>, vector<1x4x256xf32>
    %136 = vector.shape_cast %135 : vector<1x4x256xf32> to vector<4x256xf32>
    %137 = vector.broadcast %28 : vector<1x256xf32> to vector<4x256xf32>
    %138 = arith.mulf %136, %137 : vector<4x256xf32>
    %139 = arith.truncf %138 : vector<4x256xf32> to vector<4x256xbf16>
    %c32_97 = arith.constant 32 : index
    %c0_98 = arith.constant 0 : index
    %140 = vector.load %arg8[%c32_97, %c0_98] : memref<36x256xbf16, #tpu.memory_space<vmem>>, vector<4x256xbf16>
    tpu.vector_store %arg8[%c32_97, %c0_98], %139 {strides = array<i32>} : memref<36x256xbf16, #tpu.memory_space<vmem>>, vector<4x256xbf16>,
    %c0_99 = arith.constant 0 : index
    %c0_100 = arith.constant 0 : index
    %141 = vector.load %arg4[%c0_99, %c0_100] : memref<4x36xbf16, #tpu.memory_space<vmem>>, vector<4x36xbf16>
    %c0_101 = arith.constant 0 : index
    %c0_102 = arith.constant 0 : index
    %142 = vector.load %arg8[%c0_101, %c0_102] : memref<36x256xbf16, #tpu.memory_space<vmem>>, vector<36x256xbf16>
    %cst_103 = arith.constant dense<0.000000e+00> : vector<4x256xf32>
    %143 = tpu.matmul %141, %142, %cst_103 {dimension_numbers = #tpu.dot_dimension_numbers<[1], [0], [0], [1], [0, 0, 1, 1], [], []>} : vector<4x36xbf16>, vector<36x256xbf16>, vector<4x256xf32> -> vector<4x256xf32>
    %c0_104 = arith.constant 0 : index
    %c0_105 = arith.constant 0 : index
    %144 = vector.load %arg5[%c0_104, %c0_105] : memref<4x1xf32, #tpu.memory_space<vmem>>, vector<4x1xf32>
    %145 = vector.broadcast %144 : vector<4x1xf32> to vector<4x256xf32>
    %146 = arith.addf %143, %145 : vector<4x256xf32>
    %c0_106 = arith.constant 0 : index
    %c0_107 = arith.constant 0 : index
    %c0_108 = arith.constant 0 : index
    %147 = vector.load %arg1[%c0_106, %c0_107, %c0_108] : memref<1x4x256xf32, #tpu.memory_space<vmem>>, vector<1x4x256xf32>
    %148 = vector.shape_cast %147 : vector<1x4x256xf32> to vector<4x256xf32>
    %149 = arith.addf %146, %148 : vector<4x256xf32>
    %cst_109 = arith.constant 0.000000e+00 : f32
    %150 = vector.broadcast %cst_109 : f32 to vector<4x256xf32>
    %151 = arith.maximumf %149, %150 : vector<4x256xf32>
    %c0_110 = arith.constant 0 : index
    %c0_111 = arith.constant 0 : index
    %c0_112 = arith.constant 0 : index
    %152 = vector.load %arg6[%c0_110, %c0_111, %c0_112] : memref<1x4x256xf32, #tpu.memory_space<vmem>>, vector<1x4x256xf32>
    %153 = vector.shape_cast %152 : vector<1x4x256xf32> to vector<4x256xf32>
    %154 = vector.shape_cast %151 : vector<4x256xf32> to vector<1x4x256xf32>
    tpu.vector_store %arg6[%c0_110, %c0_111, %c0_112], %154 {strides = array<i32>} : memref<1x4x256xf32, #tpu.memory_space<vmem>>, vector<1x4x256xf32>,
    return
  }
  func.func @transform_0(%arg0: i32) -> (i32, i32, i32) {
    %c0_i32 = arith.constant 0 : i32
    %c0_i32_0 = arith.constant 0 : i32
    %c0_i32_1 = arith.constant 0 : i32
    return %arg0, %c0_i32, %c0_i32_0 : i32, i32, i32
  }
  func.func @transform_1(%arg0: i32) -> (i32, i32) {
    %c0_i32 = arith.constant 0 : i32
    %c0_i32_0 = arith.constant 0 : i32
    %c0_i32_1 = arith.constant 0 : i32
    return %c0_i32, %c0_i32_0 : i32, i32
  }
  func.func @transform_2(%arg0: i32) -> (i32, i32) {
    %c0_i32 = arith.constant 0 : i32
    %c0_i32_0 = arith.constant 0 : i32
    %c0_i32_1 = arith.constant 0 : i32
    return %c0_i32, %c0_i32_0 : i32, i32
  }
  func.func @transform_3(%arg0: i32) -> (i32, i32) {
    %c0_i32 = arith.constant 0 : i32
    %c0_i32_0 = arith.constant 0 : i32
    %c0_i32_1 = arith.constant 0 : i32
    return %c0_i32, %c0_i32_0 : i32, i32
  }
  func.func @transform_4(%arg0: i32) -> (i32, i32) {
    %c0_i32 = arith.constant 0 : i32
    %c0_i32_0 = arith.constant 0 : i32
    %c0_i32_1 = arith.constant 0 : i32
    return %c0_i32, %c0_i32_0 : i32, i32
  }
  func.func @transform_5(%arg0: i32) -> (i32, i32, i32) {
    %c0_i32 = arith.constant 0 : i32
    %c0_i32_0 = arith.constant 0 : i32
    %c0_i32_1 = arith.constant 0 : i32
    return %arg0, %c0_i32, %c0_i32_0 : i32, i32, i32
  }
}

</mosaic_0001>

<bundles_post_ra>
// kernel: tpu_custom_call.1
= control target key start
LH: loop header
LB: loop body
LE: loop exit
PB: predicated region body
PF: predicated region fallthrough
CT: control target
= control target key end

     0   :  { %10 = vsyncpa [#allocation5], 0  ;;  %s1716_s0 = inlined_call_operand.hbm [shape: f32[2,4,256], index: 0, kind: input, shape index: {}]   ;;  %s1717_s1 = inlined_call_operand.vmem [shape: bf16[4,36], index: 1, kind: input, shape index: {}]   ;;  %s1718_s2 = inlined_call_operand.vmem [shape: f32[4,1], index: 2, kind: input, shape index: {}]   ;;  %s1719_s3 = inlined_call_operand.vmem [shape: bf16[4,36], index: 3, kind: input, shape index: {}]   ;;  %s1720_s4 = inlined_call_operand.vmem [shape: f32[4,1], index: 4, kind: input, shape index: {}]   ;;  %s1721_s5 = inlined_call_operand.hbm [shape: f32[2,4,256], index: 5, kind: output, shape index: {}]  }
   0x1   :  { %12 = vsyncpa [#allocation5 + $0x1], 0 }
   0x2   :  { %13 = vsyncpa [#allocation6], 0 }
   0x3   :  { %15 = vsyncpa [#allocation6 + $0x1], 0  ;;  %s1355_s18 = smov 0   ;;  %s1357_s19 = smov 0  }
   0x4   :  { %s1359_s20 = smov 0   ;;  %s1361_s21 = smov 0  }
   0x5 LB: > { %s1376_s22 = sadd.s32 4294967295, %s1313_s21   ;;  %s1095_s23 = sadd.s32 4294967294, %s1313_s21   ;;  %s1313_s21 = sphi %s1361_s21, %s1731_s21   ;;  %s1309_s20 = sphi %s1359_s20, %s1730_s20   ;;  %s1305_s19 = sphi %s1357_s19, %s1729_s19   ;;  %s1301_s18 = sphi %s1355_s18, %s1728_s18  }
   0x6   : > { %s1380_s24 = sadd.s32 1, %s1313_s21   ;;  %s28_s25 = sadd.s32 1, %s1309_s20 }
   0x7   : > { %s25_s26 = ssub.s32 %s1313_s21, %s1380_s24  ;;  %p35_p0 = scmp.ne.s32.totalorder %s1309_s20, %s1305_s19 }
   0x8   : > { %p26_p1 = scmp.eq.s32.totalorder %s25_s26, 0  ;;  %p36_p2 = scmp.eq.s32.totalorder %s1313_s21, 0 }
   0x9   : > { %p41_p3 = scmp.ne.s32.totalorder %s1305_s19, %s1301_s18  ;;  %p42_p4 = scmp.eq.s32.totalorder %s1376_s22, 0 }
   0xa   : > { %s1392_s27 = scalar_select %p26_p1, %s1309_s20, %s28_s25  }
   0xb   : > { %p1394_p5 = por %p36_p2, %p35_p0  ;;  %p1398_p6 = por %p42_p4, %p41_p3 }
   0xc   : > { %p149_p7 = scmp.eq.s32.totalorder %s1376_s22, 1  ;;  %p155_p8 = scmp.eq.s32.totalorder %s1095_s23, 1 }
   0xd   : > { %p1171_p10 = scmp.lt.s32.totalorder %s1313_s21, 2  ;;  %s187_s7 = sand.u32 1, %s1309_s20  }
   0xe   : > { %p1405_p11 = por %p149_p7, %p35_p0  ;;  %p1409_p12 = por %p155_p8, %p41_p3 }
   0xf   : > { %s1149_s8 = sshll.u32 %s1313_s21, 3  ;;  %s1098_s9 = sshll.u32 %s187_s7, 3 }
  0x10   : > { %s196_s12 = scalar_lea.hbm %s1716_s0, %s1149_s8  ;;  %s191_s14 = scalar_lea.vmem [#allocation4], %s1098_s9 }
  0x11   : > { %s198_s13 = sshll.u32 %s196_s12, 4  ;;  %s200_s15 = sshll.u32 %s191_s14, 4  ;;  %s199_s13 = int_to_ptr.hbm [resolvable:$true] %s198_s13  ;;  %s201_s15 = int_to_ptr.vmem [resolvable:$true] %s200_s15 }
  0x12   : > { %p1420_p13 = pnand %p1171_p10, %p1394_p5  ;;  %p1101_p0 = scmp.ge.s32.totalorder %s1313_s21, 1 }
  0x13   : > { %p205_p1 = scmp.lt.s32.totalorder %s1313_s21, 3  ;;  %s188_s17 = scalar_lea.sflag [#allocation5], %s187_s7 }
  0x14   : > { %s1217_s23 = sshra.s32 %s199_s13, 4  ;;  %p1221_p3 = pneg %p1420_p13  ;;  %s1218_s23 = int_to_ptr.hbm [resolvable:$true] %s1217_s23 }
  0x15   : > { %s1219_s25 = scalar_lea.hbm %s1218_s23, 8  ;;  %s1224_s28 = scalar_lea.hbm %s1716_s0, 16 }
  0x16   : > { %p1220_p2 = scmp.ne.s32.totalorder %s1218_s23, %s1219_s25  ;;  %p1225_p5 = scmp.lt.s32.totalorder %s1218_s23, %s1716_s0 }
  0x17   : > { %p1226_p8 = scmp.lt.s32.totalorder %s1224_s28, %s1219_s25 }
  0x18   : > { %p1222_p4 = pnand %p1221_p3, %p1220_p2 }
  0x19   : > { %p1227_p10 = por %p1226_p8, %p1225_p5 }
  0x1a   : > { %p1223_p7 = pneg %p1222_p4 }
  0x1c   : > { %p1228_p9 = pnand %p1227_p10, %p1223_p7 }
  0x1e   : > { %1231 = shalt.err (!%p1228_p9)
}
  0x1f   : > { %1166 = dma.hbm_to_vmem [thread:$0]  (!%p1420_p13), %s199_s13, 128, %s201_s15, %s188_s17  }
  0x20   : > { %p206_p2 = pnand %p1101_p0, %p205_p1 }
  0x21   : > { %s1441_s7 = sand.u32 (!%p206_p2), 1, %s1305_s19  }
  0x22   : > { %209 = sbr.rel (%p206_p2) target bundleno = 905 (0x389), region = 40  ;;  %s1102_s11 = sshll.u32 (!%p206_p2), %s1441_s7, 3 }
  0x23   : > { %s212_s12 = scalar_lea.sflag (!%p206_p2), [#allocation5], %s1441_s7  ;;  %s1447_s14 = scalar_lea.vmem (!%p206_p2), [#allocation4], %s1102_s11 }
  0x27   : > { %v246_v0 = vlaneseq }
  0x28   : > { %1292 = dma.done.wait (%p1398_p6), %s212_s12, 128  }
  0x29   : > { %1294 = vsyncadd (%p1398_p6), %s212_s12, 4294967168  ;;  %v1315_v1 = vmov 0.0   ;;  %v247_v2 = vand.u32 127, %v246_v0  ;;  %vm292_vm3 = vcmask 1043456   ;;  %s1316_s29 = smov 111   ;;  %s1317_s13 = smov 127  }
  0x2a   : > { %244 = vst [vmem:[#allocation2] sm:$0xf] %v1315_v1  ;;  %s1318_s15 = smov 15   ;;  %s1319_s16 = smov 113   ;;  %v1462_v14 = vld [vmem:[%s1447_s14] sm:$0xff]  ;;  %vm297_vm5 = vcmask 908288  }
  0x2b   : > { %245 = vst [vmem:[#allocation2 + $0xc] sm:$0xf] %v1315_v1  ;;  %v248_v3 = vadd.s32 128, %v247_v2  ;;  %v253_v4 = vand.u32 15, %v247_v2  ;;  %s1320_s17 = smov 1   ;;  %s1321_s23 = smov 17  }
  0x2c   : > { %286 = vst [vmem:[#allocation2 + $0x4] sm:$0xff] %v1462_v14  ;;  %vm369_vm6 = vcmask 924672   ;;  %vm406_vm7 = vcmask 1039360   ;;  %vm436_vm8 = vcmask 7168   ;;  %vm397_vm9 = vcmask 121856   ;;  %s1322_s25 = smov 112  }
  0x2d   : > { %v260_v5 = vand.u32 15, %v248_v3  ;;  %vm273_vm0 = vcmp.gt.s32.totalorder %v253_v4, 0  ;;  %vm279_vm4 = vcmp.lt.s32.totalorder %v253_v4, 15  ;;  %vm326_vm10 = vcmask 138240   ;;  %s1323_s26 = smov 16   ;;  %s1267_s12 = scalar_lea.hbm %s1721_s5, 16 }
  0x2e   : > { %v1104_v6 = vsel %vm273_vm0, 1.0, %v1315_v1  ;;  %v1106_v12 = vsel %vm279_vm4, 1.0, %v1315_v1  ;;  %vm551_vm11 = vcmask 916480   ;;  %vm356_vm12 = vcmask 130048  }
  0x2f   : > { %vm274_vm1 = vcmp.gt.s32.totalorder %v260_v5, 0  ;;  %vm280_vm2 = vcmp.lt.s32.totalorder %v260_v5, 15  ;;  %vm633_vm13 = vcmask 1041408   ;;  %vm629_vm14 = vcmask 293888  }
  0x30   : > { %v1105_v7 = vsel %vm274_vm1, 1.0, %v1315_v1  ;;  %v1107_v9 = vsel %vm280_vm2, 1.0, %v1315_v1 }
  0x31   : > { %v291_v8 = vrot.slane %v1105_v7, 4  ;;  %v364_v11 = vrot.slane %v1107_v9, 4 }
  0x32   : > { %v450_v48 = vld [vmem:[#allocation2 + $0xc] sm:$0xf] }
  0x33   : > { %v293_v10 = vsel %vm292_vm3, %v1104_v6, %v291_v8  ;;  %v365_v13 = vsel %vm292_vm3, %v1106_v12, %v364_v11  ;;  %v288_v16 = vld [vmem:[#allocation2 + $0x8] sm:$0xf]  ;;  %v287_v17 = vld [vmem:[#allocation2] sm:$0xff]  ;;  %v489_v55 = vld [vmem:[#allocation2 + $0xc] sm:$0xf] }
  0x34   : > { %294 = vrot.lane.b32.xlu0 %v293_v10, %s1316_s29  ;;  %403 = vrot.lane.b32.xlu1 %v293_v10, %s1317_s13  ;;  %v331_v24 = vld [vmem:[#allocation2 + $0x8] sm:$0xf]  ;;  %v526_v1 = vld [vmem:[#allocation2 + $0xc] sm:$0xf] }
  0x35   : > { %490 = vrot.lane.b32.xlu2 %v293_v10, %s1318_s15  ;;  %v361_v30 = vld [vmem:[#allocation2 + $0x8] sm:$0xf]  ;;  %v556_v9 = vld [vmem:[#allocation2 + $0xc] sm:$0xf] }
  0x36   : > { %v402_v39 = vld [vmem:[#allocation2 + $0x8] sm:$0xf] }
  0x3c   : > { %366 = vrot.lane.b32.xlu0 %v365_v13, %s1319_s16  ;;  %451 = vrot.lane.b32.xlu1 %v365_v13, %s1320_s17 }
  0x3d   : > { %557 = vrot.lane.b32.xlu2 %v365_v13, %s1321_s23 }
  0x8f   : > { %v491_v50 = vpop.permute.xlu2 %490 }
  0x90   : > { %v1513_v54 = vrot.slane %v491_v50, 4 }
  0x92   : > { %v498_v57 = vmul.f32 %v1513_v54, %v489_v55  ;;  %v1528_v63 = vsel %vm397_vm9, %v1513_v54, %v491_v50 }
  0x93   : > { %v497_v2 = vmul.f32 %v1528_v63, %v1462_v14 }
  0x97   : > { %v558_v3 = vpop.permute.xlu2 %557 }
  0x98   : > { %v1533_v8 = vrot.slane %v558_v3, 4 }
  0x9a   : > { %v565_v11 = vmul.f32 %v1533_v8, %v556_v9 }
  0xa6   : > { %v295_v15 = vpop.permute.xlu0 %294  ;;  %v404_v32 = vpop.permute.xlu1 %403 }
  0xa7   : > { %v1465_v18 = vrot.slane %v295_v15, 4  ;;  %v1483_v35 = vrot.slane %v404_v32, 4 }
  0xa9   : > { %v1469_v19 = vsel %vm297_vm5, %v1465_v18, %v295_v15  ;;  %v302_v20 = vmul.f32 %v1465_v18, %v288_v16  ;;  %v1493_v40 = vsel %vm406_vm7, %v1483_v35, %v404_v32  ;;  %v411_v41 = vmul.f32 %v1483_v35, %v402_v39 }
  0xaa   : > { %v301_v21 = vmul.f32 %v1469_v19, %v287_v17  ;;  %v410_v42 = vmul.f32 %v1493_v40, %v287_v17 }
  0xab   : > { %307 = vst [vmem:[#allocation1 + $0x10] ss:$2 sm:$0xff] %v302_v20  ;;  %v1540_v20 = vsel %vm326_vm10, %v1533_v8, %v558_v3 }
  0xac   : > { %305 = vst [vmem:[#allocation1] ss:$2 sm:$0xff] %v301_v21 }
  0xae   : > { %v367_v22 = vpop.permute.xlu0 %366  ;;  %v452_v43 = vpop.permute.xlu1 %451 }
  0xaf   : > { %v1473_v25 = vrot.slane %v367_v22, 4  ;;  %v1503_v47 = vrot.slane %v452_v43, 4 }
  0xb1   : > { %v1479_v31 = vsel %vm369_vm6, %v1473_v25, %v367_v22  ;;  %v374_v33 = vmul.f32 %v1473_v25, %v361_v30  ;;  %v459_v49 = vmul.f32 %v1503_v47, %v450_v48  ;;  %v1517_v56 = vsel %vm436_vm8, %v1503_v47, %v452_v43 }
  0xb2   : > { %v310_v23 = vld.sshfl [vmem:[#allocation1 + $0x10] sm:$0xff pattern:$0x75316420]  ;;  %v373_v34 = vmul.f32 %v1479_v31, %v287_v17  ;;  %v458_v58 = vmul.f32 %v1517_v56, %v1462_v14 }
  0xb3   : > { %v308_v26 = vld.sshfl [vmem:[#allocation1] sm:$0xff pattern:$0x75316420]  ;;  %v309_v27 = vld.sshfl [vmem:[#allocation1 + $0x8] sm:$0xff pattern:$0x75316420]  ;;  %v315_v28 = vpack.c.bf16 %v310_v23, %v310_v23  ;;  %v564_v23 = vmul.f32 %v1540_v20, %v1462_v14 }
  0xb4   : > { %334 = vst [vmem:[#allocation1] ss:$2 sm:$0xff] %v287_v17  ;;  %v314_v29 = vpack.c.bf16 %v309_v27, %v308_v26 }
  0xb5   : > { %336 = vst [vmem:[#allocation1 + $0x10] ss:$2 sm:$0xff] %v331_v24  ;;  %320 = vrot.lane.b32.xlu0 %v315_v28, %s1321_s23 }
  0xb6   : > { %318 = vrot.lane.b32.xlu2 %v314_v29, %s1321_s23 }
  0xbb   : > { %v1485_v36 = vld.sshfl [vmem:[#allocation1] sm:$0xff pattern:$0x75316420]  ;;  %v1487_v37 = vld.sshfl [vmem:[#allocation1 + $0x8] sm:$0xff pattern:$0x75316420] }
  0xbc   : > { %v1489_v38 = vld.sshfl [vmem:[#allocation1 + $0x10] sm:$0xff pattern:$0x75316420]  ;;  %377 = vst [vmem:[#allocation1] ss:$2 sm:$0xff] %v373_v34  ;;  %v343_v43 = vpack.c.bf16 %v1487_v37, %v1485_v36 }
  0xbd   : > { %379 = vst [vmem:[#allocation1 + $0x10] ss:$2 sm:$0xff] %v374_v33  ;;  %v344_v21 = vpack.c.bf16 %v1489_v38, %v1489_v38 }
  0xbe   : > { %v347_v48 = vrot.slane %v343_v43, 6 }
  0xbf   : > { %v348_v24 = vrot.slane %v344_v21, 6  ;;  %v598_v21 = vld [vmem:[%s1718_s2] sm:$0xf] }
  0xc3   : > { %v1497_v44 = vld.sshfl [vmem:[#allocation1] sm:$0xff pattern:$0x75316420]  ;;  %v1499_v45 = vld.sshfl [vmem:[#allocation1 + $0x8] sm:$0xff pattern:$0x75316420] }
  0xc4   : > { %v1501_v46 = vld.sshfl [vmem:[#allocation1 + $0x10] sm:$0xff pattern:$0x75316420]  ;;  %414 = vst [vmem:[#allocation1] ss:$2 sm:$0xff] %v410_v42 }
  0xc5   : > { %416 = vst [vmem:[#allocation1 + $0x10] ss:$2 sm:$0xff] %v411_v41 }
  0xcb   : > { %v1506_v51 = vld.sshfl [vmem:[#allocation1] sm:$0xff pattern:$0x75316420]  ;;  %v1508_v52 = vld.sshfl [vmem:[#allocation1 + $0x8] sm:$0xff pattern:$0x75316420] }
  0xcc   : > { %v1510_v53 = vld.sshfl [vmem:[#allocation1 + $0x10] sm:$0xff pattern:$0x75316420]  ;;  %442 = vst [vmem:[#allocation1] ss:$2 sm:$0xff] %v1462_v14  ;;  %v423_v33 = vpack.c.bf16 %v1508_v52, %v1506_v51  ;;  %v387_v51 = vpack.c.bf16 %v1501_v46, %v1501_v46 }
  0xcd   : > { %464 = vst [vmem:[#allocation1 + $0x10] ss:$2 sm:$0xff] %v459_v49  ;;  %v386_v49 = vpack.c.bf16 %v1499_v45, %v1497_v44  ;;  %v424_v50 = vpack.c.bf16 %v1510_v53, %v1510_v53 }
  0xce   : > { %v427_v41 = vrot.slane %v423_v33, 6 }
  0xcf   : > { %v428_v36 = vrot.slane %v424_v50, 6 }
  0xd3   : > { %v1522_v59 = vld.sshfl [vmem:[#allocation1] sm:$0xff pattern:$0x75316420]  ;;  %v1524_v60 = vld.sshfl [vmem:[#allocation1 + $0x8] sm:$0xff pattern:$0x75316420] }
  0xd4   : > { %v467_v61 = vld.sshfl [vmem:[#allocation1 + $0x10] sm:$0xff pattern:$0x75316420]  ;;  %462 = vst [vmem:[#allocation1] ss:$2 sm:$0xff] %v458_v58  ;;  %v447_v45 = vpack.c.bf16 %v1524_v60, %v1522_v59 }
  0xd5   : > { %503 = vst [vmem:[#allocation1 + $0x10] ss:$2 sm:$0xff] %v498_v57  ;;  %v472_v62 = vpack.c.bf16 %v467_v61, %v467_v61 }
  0xd6   : > { %448 = vst [vmem:[#allocation3 + $0x10] sm:$0x33] %v447_v45 }
  0xd7   : > { %v476_v0 = vrot.slane %v472_v62, 6 }
  0xd9   : > { %479 = vrot.lane.b32.xlu0 %v476_v0, %s1317_s13 }
  0xdb   : > { %v465_v4 = vld.sshfl [vmem:[#allocation1] sm:$0xff pattern:$0x75316420]  ;;  %v466_v5 = vld.sshfl [vmem:[#allocation1 + $0x8] sm:$0xff pattern:$0x75316420] }
  0xdc   : > { %v506_v6 = vld.sshfl [vmem:[#allocation1 + $0x10] sm:$0xff pattern:$0x75316420]  ;;  %501 = vst [vmem:[#allocation1] ss:$2 sm:$0xff] %v497_v2  ;;  %v471_v10 = vpack.c.bf16 %v466_v5, %v465_v4 }
  0xdd   : > { %v511_v7 = vpack.c.bf16 %v506_v6, %v506_v6  ;;  %531 = vst [vmem:[#allocation1 + $0x10] ss:$2 sm:$0xff] %v526_v1 }
  0xde   : > { %v475_v17 = vrot.slane %v471_v10, 6 }
  0xdf   : > { %516 = vrot.lane.b32.xlu2 %v511_v7, %s1319_s16 }
  0xe3   : > { %v504_v12 = vld.sshfl [vmem:[#allocation1] sm:$0xff pattern:$0x75316420]  ;;  %v505_v13 = vld.sshfl [vmem:[#allocation1 + $0x8] sm:$0xff pattern:$0x75316420] }
  0xe4   : > { %v510_v15 = vpack.c.bf16 %v505_v13, %v504_v12  ;;  %529 = vst [vmem:[#allocation1] ss:$2 sm:$0xff] %v1462_v14  ;;  %v534_v16 = vld.sshfl [vmem:[#allocation1 + $0x10] sm:$0xff pattern:$0x75316420] }
  0xe5   : > { %570 = vst [vmem:[#allocation1 + $0x10] ss:$2 sm:$0xff] %v565_v11  ;;  %v539_v22 = vpack.c.bf16 %v534_v16, %v534_v16 }
  0xe6   : > { %514 = vrot.lane.b32.xlu1 %v510_v15, %s1319_s16 }
  0xe7   : > { %477 = vrot.lane.b32.xlu2 %v475_v17, %s1317_s13  ;;  %v543_v26 = vrot.slane %v539_v22, 6 }
  0xeb   : > { %v532_v27 = vld.sshfl [vmem:[#allocation1] sm:$0xff pattern:$0x75316420]  ;;  %v533_v28 = vld.sshfl [vmem:[#allocation1 + $0x8] sm:$0xff pattern:$0x75316420] }
  0xec   : > { %v538_v29 = vpack.c.bf16 %v533_v28, %v532_v27  ;;  %568 = vst [vmem:[#allocation1] ss:$2 sm:$0xff] %v564_v23  ;;  %v573_v32 = vld.sshfl [vmem:[#allocation1 + $0x10] sm:$0xff pattern:$0x75316420] }
  0xed   : > { %v578_v34 = vpack.c.bf16 %v573_v32, %v573_v32 }
  0xee   : > { %546 = vrot.lane.b32.xlu1 %v543_v26, %s1322_s25  ;;  %v542_v30 = vrot.slane %v538_v29, 6 }
  0xef   : > { %351 = vrot.lane.b32.xlu2 %v348_v24, %s1323_s26  ;;  %v1324_v24 = vmov 0  }
  0xf0   : > { %544 = vrot.lane.b32.xlu0 %v542_v30, %s1322_s25  ;;  %1215 = vset.pattern.permute.xlu1 %v1324_v24 }
  0xf1   : > { %1216 = vset.pattern.permute.xlu0 %v1324_v24 }
  0xf3   : > { %v571_v38 = vld.sshfl [vmem:[#allocation1] sm:$0xff pattern:$0x75316420]  ;;  %v572_v39 = vld.sshfl [vmem:[#allocation1 + $0x8] sm:$0xff pattern:$0x75316420] }
  0xf4   : > { %v577_v42 = vpack.c.bf16 %v572_v39, %v571_v38 }
  0xf6   : > { %583 = vrot.lane.b32.xlu1 %v578_v34, %s1316_s29 }
  0xf7   : > { %429 = vrot.lane.b32.xlu2 %v427_v41, %s1320_s17 }
  0xf8   : > { %581 = vrot.lane.b32.xlu0 %v577_v42, %s1316_s29 }
  0xfe   : > { %349 = vrot.lane.b32.xlu1 %v347_v48, %s1323_s26 }
 0x100   : > { %390 = vrot.lane.b32.xlu0 %v386_v49, %s1318_s15 }
 0x106   : > { %392 = vrot.lane.b32.xlu1 %v387_v51, %s1318_s15 }
 0x108   : > { %431 = vrot.lane.b32.xlu0 %v428_v36, %s1320_s17 }
 0x10e   : > { %601 = vperm.xlu1 %1215, %v598_v21  }
 0x110   : > { %v319_v37 = vpop.permute.xlu2 %318 }
 0x111   : > { %v322_v55 = vrot.slane %v319_v37, 4 }
 0x127   : > { %v321_v52 = vpop.permute.xlu0 %320 }
 0x128   : > { %v323_v57 = vrot.slane %v321_v52, 4 }
 0x12a   : > { %v325_v58 = vsel %vm292_vm3, %v322_v55, %v323_v57 }
 0x12b   : > { %v327_v44 = vsel %vm326_vm10, %v319_v37, %v325_v58 }
 0x12c   : > { %329 = vst [vmem:[#allocation3] sm:$0x33] %v327_v44 }
 0x139   : > { %v517_v53 = vpop.permute.xlu2 %516 }
 0x13a   : > { %v519_v4 = vrot.slane %v517_v53, 4 }
 0x141   : > { %v478_v46 = vpop.permute.xlu2 %477 }
 0x142   : > { %v481_v62 = vrot.slane %v478_v46, 4 }
 0x149   : > { %v352_v22 = vpop.permute.xlu2 %351 }
 0x14a   : > { %v354_v27 = vrot.slane %v352_v22, 4 }
 0x14b   : > { %v480_v61 = vpop.permute.xlu0 %479 }
 0x14c   : > { %v482_v0 = vrot.slane %v480_v61, 4 }
 0x14e   : > { %v483_v1 = vsel %vm292_vm3, %v481_v62, %v482_v0 }
 0x14f   : > { %v485_v2 = vsel %vm406_vm7, %v478_v46, %v483_v1 }
 0x150   : > { %487 = vst [vmem:[#allocation3 + $0x10] sm:$0xcc] %v485_v2 }
 0x151   : > { %v430_v38 = vpop.permute.xlu2 %429 }
 0x152   : > { %v433_v51 = vrot.slane %v430_v38, 4 }
 0x157   : > { %v1118_v46 = vld [vmem:[#allocation3 + $0x10] sm:$0xf]  ;;  %v1152_v61 = vld [vmem:[#allocation3 + $0x14] sm:$0xf] }
 0x158   : > { %v515_v3 = vpop.permute.xlu1 %514 }
 0x159   : > { %v518_v5 = vrot.slane %v515_v3, 4 }
 0x15b   : > { %v520_v6 = vsel %vm292_vm3, %v518_v5, %v519_v4 }
 0x15c   : > { %v522_v7 = vsel %vm369_vm6, %v515_v3, %v520_v6 }
 0x15d   : > { %524 = vst [vmem:[#allocation3 + $0x18] sm:$0x33] %v522_v7 }
 0x160   : > { %v547_v59 = vpop.permute.xlu1 %546 }
 0x161   : > { %v549_v60 = vrot.slane %v547_v59, 4  ;;  %v592_v59 = vld [vmem:[%s1717_s1] sm:$0x3] }
 0x162   : > { %v545_v9 = vpop.permute.xlu0 %544 }
 0x163   : > { %v548_v10 = vrot.slane %v545_v9, 4 }
 0x165   : > { %v550_v11 = vsel %vm292_vm3, %v548_v10, %v549_v60 }
 0x166   : > { %v552_v12 = vsel %vm551_vm11, %v545_v9, %v550_v11 }
 0x167   : > { %554 = vst [vmem:[#allocation3 + $0x18] sm:$0xcc] %v552_v12 }
 0x168   : > { %v584_v13 = vpop.permute.xlu1 %583 }
 0x169   : > { %v586_v15 = vrot.slane %v584_v13, 4 }
 0x16a   : > { %v582_v16 = vpop.permute.xlu0 %581 }
 0x16b   : > { %v585_v17 = vrot.slane %v582_v16, 4 }
 0x16d   : > { %v587_v23 = vsel %vm292_vm3, %v585_v17, %v586_v15 }
 0x16e   : > { %v589_v26 = vsel %vm297_vm5, %v582_v16, %v587_v23  ;;  %v1153_v37 = vld [vmem:[#allocation3 + $0x14] sm:$0xf0]  ;;  %v1120_v44 = vld [vmem:[#allocation3 + $0x18] sm:$0xf0] }
 0x16f   : > { %591 = vst [vmem:[#allocation3 + $0x20] sm:$0x33] %v589_v26  ;;  %v1119_v0 = vor.u32 %v1153_v37, %v1118_v46  ;;  %v1123_v1 = vor.u32 %v1152_v61, %v1120_v44  ;;  %v862_v61 = vld [vmem:[#allocation2 + $0xc] sm:$0xf] }
 0x170   : > { %v350_v28 = vpop.permute.xlu1 %349 }
 0x171   : > { %v353_v29 = vrot.slane %v350_v28, 4 }
 0x172   : > { %v391_v30 = vpop.permute.xlu0 %390 }
 0x173   : > { %v355_v32 = vsel %vm292_vm3, %v353_v29, %v354_v27  ;;  %v394_v43 = vrot.slane %v391_v30, 4 }
 0x174   : > { %v357_v33 = vsel %vm356_vm12, %v350_v28, %v355_v32 }
 0x175   : > { %359 = vst [vmem:[#allocation3] sm:$0xcc] %v357_v33 }
 0x176   : > { %v597_v34 = vld [vmem:[#allocation3 + $0x20] sm:$0x33] }
 0x177   : > { %v617_v39 = vunpack.c.l.b16 %v597_v34  ;;  %v618_v41 = vunpack.c.h.b16 %v597_v34 }
 0x178   : > { %v393_v42 = vpop.permute.xlu1 %392 }
 0x179   : > { %v395_v48 = vrot.slane %v393_v42, 4  ;;  %v623_v49 = vpack.c.b16 %v617_v39, %v617_v39  ;;  %v624_v50 = vpack.c.b16 %v618_v41, %v618_v41 }
 0x17a   : > { %v432_v36 = vpop.permute.xlu0 %431 }
 0x17b   : > { %v396_v52 = vsel %vm292_vm3, %v394_v43, %v395_v48  ;;  %v434_v55 = vrot.slane %v432_v36, 4  ;;  %v635_v57 = vsel %vm633_vm13, %v623_v49, 0  ;;  %v638_v58 = vsel %vm633_vm13, %v624_v50, 0 }
 0x17c   : > { %v398_v45 = vsel %vm397_vm9, %v391_v30, %v396_v52  ;;  %645 = vmatpush.bf16.msra.mxu0 %v635_v57  ;;  %658 = vmatpush.bf16.msra.mxu1 %v638_v58  ;;  %v1110_v2 = vld [vmem:[#allocation3] sm:$0xf]  ;;  %v1150_v4 = vld [vmem:[#allocation3 + $0x4] sm:$0xf] }
 0x17d   : > { %400 = vst [vmem:[#allocation3 + $0x8] sm:$0x33] %v398_v45  ;;  %v435_v53 = vsel %vm292_vm3, %v433_v51, %v434_v55 }
 0x17e   : > { %v437_v62 = vsel %vm436_vm8, %v430_v38, %v435_v53 }
 0x17f   : > { %439 = vst [vmem:[#allocation3 + $0x8] sm:$0xcc] %v437_v62 }
 0x180   : > { %646 = vmatpush.bf16.msra.mxu0 %v1119_v0  ;;  %659 = vmatpush.bf16.msra.mxu1 %v1123_v1  ;;  %v602_v60 = vpop.permute.xlu1 %601 }
 0x186   : > { %v1151_v3 = vld [vmem:[#allocation3 + $0x4] sm:$0xf0]  ;;  %v1112_v5 = vld [vmem:[#allocation3 + $0x8] sm:$0xf0] }
 0x187   : > { %v1111_v6 = vor.u32 %v1151_v3, %v1110_v2  ;;  %v1115_v7 = vor.u32 %v1150_v4, %v1112_v5  ;;  %v891_v2 = vld [vmem:[#allocation2 + $0xc] sm:$0xf] }
 0x188   : > { %v893_v4 = vmul.f32 %v891_v2, %v1533_v8  ;;  %v925_v2 = vld [vmem:[%s1720_s4] sm:$0xf] }
 0x189   : > { %647 = vmatpush.bf16.msra.mxu0 %v1111_v6  ;;  %660 = vmatpush.bf16.msra.mxu1 %v1115_v7 }
 0x18c   : > { %1124 = vmatmul.msk.bf16.vlgmr.msra.gmra.mxu0 %vm629_vm14, %v592_v59  ;;  %1125 = vmatmul.msk.bf16.vlgmr.msra.gmra.mxu1 %vm629_vm14, %v592_v59 }
 0x209   : > { %v649_v9 = vpop.f32.mrf.mxu0  ;;  %v662_v10 = vpop.f32.mrf.mxu1 }
 0x20a   : > { %v650_v11 = vadd.f32 %v649_v9, %v602_v60  ;;  %v663_v12 = vadd.f32 %v662_v10, %v602_v60 }
 0x20c   : > { %v667_v13 = vmax.f32 %v663_v12, 0.0  ;;  %v666_v15 = vmax.f32 %v650_v11, 0.0 }
 0x20e   : > { %v670_v16 = vrot.slane %v667_v13, 4 }
 0x210   : > { %v1597_v17 = vsel %vm292_vm3, %v666_v15, %v670_v16 }
 0x211   : > { %673 = vst [vmem:[#allocation2 + $0x4] sm:$0xff] %v1597_v17  ;;  %v651_v21 = vpop.f32.mrf.mxu0  ;;  %v664_v22 = vpop.f32.mrf.mxu1  ;;  %v834_v62 = vmul.f32 %v1597_v17, %v1528_v63  ;;  %v892_v10 = vmul.f32 %v1597_v17, %v1540_v20 }
 0x218   : > { %v674_v23 = vld [vmem:[#allocation2] sm:$0xff]  ;;  %v675_v24 = vld [vmem:[#allocation2 + $0x8] sm:$0xf] }
 0x219   : > { %v676_v26 = vmul.f32 %v674_v23, %v1469_v19  ;;  %v677_v27 = vmul.f32 %v675_v24, %v1465_v18  ;;  %v704_v28 = vld [vmem:[#allocation2 + $0x8] sm:$0xf]  ;;  %v734_v39 = vmul.f32 %v674_v23, %v1479_v31  ;;  %v763_v48 = vmul.f32 %v674_v23, %v1493_v40  ;;  %v833_v40 = vld [vmem:[#allocation2 + $0xc] sm:$0xf] }
 0x21a   : > { %v733_v38 = vld [vmem:[#allocation2 + $0x8] sm:$0xf]  ;;  %v835_v57 = vmul.f32 %v833_v40, %v1513_v54 }
 0x21b   : > { %680 = vst [vmem:[#allocation1] ss:$2 sm:$0xff] %v676_v26  ;;  %v735_v19 = vmul.f32 %v733_v38, %v1473_v25  ;;  %v762_v43 = vld [vmem:[#allocation2 + $0x8] sm:$0xf]  ;;  %v802_v25 = vld [vmem:[#allocation2 + $0xc] sm:$0xf] }
 0x21c   : > { %682 = vst [vmem:[#allocation1 + $0x10] ss:$2 sm:$0xff] %v677_v27  ;;  %v764_v49 = vmul.f32 %v762_v43, %v1483_v35  ;;  %v804_v31 = vmul.f32 %v802_v25, %v1503_v47  ;;  %v803_v35 = vmul.f32 %v1597_v17, %v1517_v56 }
 0x222   : > { %v683_v29 = vld.sshfl [vmem:[#allocation1] sm:$0xff pattern:$0x75316420]  ;;  %v684_v30 = vld.sshfl [vmem:[#allocation1 + $0x8] sm:$0xff pattern:$0x75316420] }
 0x223   : > { %v685_v32 = vld.sshfl [vmem:[#allocation1 + $0x10] sm:$0xff pattern:$0x75316420]  ;;  %v689_v33 = vpack.c.bf16 %v684_v30, %v683_v29  ;;  %707 = vst [vmem:[#allocation1] ss:$2 sm:$0xff] %v674_v23 }
 0x224   : > { %v690_v34 = vpack.c.bf16 %v685_v32, %v685_v32  ;;  %709 = vst [vmem:[#allocation1 + $0x10] ss:$2 sm:$0xff] %v704_v28 }
 0x225   : > { %693 = vrot.lane.b32.xlu1 %v689_v33, %s1321_s23 }
 0x226   : > { %695 = vrot.lane.b32.xlu2 %v690_v34, %s1321_s23 }
 0x22a   : > { %v1606_v18 = vld.sshfl [vmem:[#allocation1] sm:$0xff pattern:$0x75316420]  ;;  %v1608_v41 = vld.sshfl [vmem:[#allocation1 + $0x8] sm:$0xff pattern:$0x75316420] }
 0x22b   : > { %v712_v42 = vld.sshfl [vmem:[#allocation1 + $0x10] sm:$0xff pattern:$0x75316420]  ;;  %738 = vst [vmem:[#allocation1] ss:$2 sm:$0xff] %v734_v39  ;;  %v716_v27 = vpack.c.bf16 %v1608_v41, %v1606_v18 }
 0x22c   : > { %740 = vst [vmem:[#allocation1 + $0x10] ss:$2 sm:$0xff] %v735_v19  ;;  %v717_v9 = vpack.c.bf16 %v712_v42, %v712_v42 }
 0x22d   : > { %v720_v28 = vrot.slane %v716_v27, 6 }
 0x22e   : > { %v721_v15 = vrot.slane %v717_v9, 6 }
 0x232   : > { %v1612_v50 = vld.sshfl [vmem:[#allocation1] sm:$0xff pattern:$0x75316420]  ;;  %v1614_v51 = vld.sshfl [vmem:[#allocation1 + $0x8] sm:$0xff pattern:$0x75316420] }
 0x233   : > { %v1616_v36 = vld.sshfl [vmem:[#allocation1 + $0x10] sm:$0xff pattern:$0x75316420]  ;;  %767 = vst [vmem:[#allocation1] ss:$2 sm:$0xff] %v763_v48  ;;  %v747_v29 = vpack.c.bf16 %v1614_v51, %v1612_v50 }
 0x234   : > { %769 = vst [vmem:[#allocation1 + $0x10] ss:$2 sm:$0xff] %v764_v49  ;;  %v748_v30 = vpack.c.bf16 %v1616_v36, %v1616_v36 }
 0x23a   : > { %v770_v37 = vld.sshfl [vmem:[#allocation1] sm:$0xff pattern:$0x75316420]  ;;  %v771_v52 = vld.sshfl [vmem:[#allocation1 + $0x8] sm:$0xff pattern:$0x75316420] }
 0x23b   : > { %794 = vst [vmem:[#allocation1] ss:$2 sm:$0xff] %v1597_v17  ;;  %v1620_v55 = vld.sshfl [vmem:[#allocation1 + $0x10] sm:$0xff pattern:$0x75316420]  ;;  %v776_v22 = vpack.c.bf16 %v771_v52, %v770_v37 }
 0x23c   : > { %809 = vst [vmem:[#allocation1 + $0x10] ss:$2 sm:$0xff] %v804_v31 }
 0x23d   : > { %v780_v20 = vrot.slane %v776_v22, 6 }
 0x242   : > { %v795_v58 = vld.sshfl [vmem:[#allocation1] sm:$0xff pattern:$0x75316420]  ;;  %v796_v44 = vld.sshfl [vmem:[#allocation1 + $0x8] sm:$0xff pattern:$0x75316420] }
 0x243   : > { %807 = vst [vmem:[#allocation1] ss:$2 sm:$0xff] %v803_v35  ;;  %v812_v45 = vld.sshfl [vmem:[#allocation1 + $0x10] sm:$0xff pattern:$0x75316420]  ;;  %v799_v53 = vpack.c.bf16 %v796_v44, %v795_v58 }
 0x244   : > { %v817_v46 = vpack.c.bf16 %v812_v45, %v812_v45  ;;  %840 = vst [vmem:[#allocation1 + $0x10] ss:$2 sm:$0xff] %v835_v57 }
 0x245   : > { %800 = vst [vmem:[#allocation3 + $0x10] sm:$0x33] %v799_v53 }
 0x246   : > { %v821_v47 = vrot.slane %v817_v46, 6 }
 0x248   : > { %824 = vrot.lane.b32.xlu2 %v821_v47, %s1317_s13 }
 0x24a   : > { %v810_v0 = vld.sshfl [vmem:[#allocation1] sm:$0xff pattern:$0x75316420]  ;;  %v811_v1 = vld.sshfl [vmem:[#allocation1 + $0x8] sm:$0xff pattern:$0x75316420] }
 0x24b   : > { %v843_v56 = vld.sshfl [vmem:[#allocation1 + $0x10] sm:$0xff pattern:$0x75316420]  ;;  %838 = vst [vmem:[#allocation1] ss:$2 sm:$0xff] %v834_v62  ;;  %v816_v3 = vpack.c.bf16 %v811_v1, %v810_v0 }
 0x24c   : > { %v848_v54 = vpack.c.bf16 %v843_v56, %v843_v56  ;;  %867 = vst [vmem:[#allocation1 + $0x10] ss:$2 sm:$0xff] %v862_v61 }
 0x24d   : > { %v820_v60 = vrot.slane %v816_v3, 6 }
 0x24e   : > { %853 = vrot.lane.b32.xlu1 %v848_v54, %s1319_s16 }
 0x252   : > { %v841_v5 = vld.sshfl [vmem:[#allocation1] sm:$0xff pattern:$0x75316420]  ;;  %v842_v6 = vld.sshfl [vmem:[#allocation1 + $0x8] sm:$0xff pattern:$0x75316420] }
 0x253   : > { %v847_v7 = vpack.c.bf16 %v842_v6, %v841_v5  ;;  %865 = vst [vmem:[#allocation1] ss:$2 sm:$0xff] %v1597_v17  ;;  %v870_v59 = vld.sshfl [vmem:[#allocation1 + $0x10] sm:$0xff pattern:$0x75316420] }
 0x254   : > { %898 = vst [vmem:[#allocation1 + $0x10] ss:$2 sm:$0xff] %v893_v4  ;;  %v875_v63 = vpack.c.bf16 %v870_v59, %v870_v59 }
 0x255   : > { %851 = vrot.lane.b32.xlu0 %v847_v7, %s1319_s16 }
 0x256   : > { %822 = vrot.lane.b32.xlu1 %v820_v60, %s1317_s13  ;;  %v879_v11 = vrot.slane %v875_v63, 6 }
 0x25a   : > { %v868_v12 = vld.sshfl [vmem:[#allocation1] sm:$0xff pattern:$0x75316420]  ;;  %v869_v8 = vld.sshfl [vmem:[#allocation1 + $0x8] sm:$0xff pattern:$0x75316420] }
 0x25b   : > { %v874_v13 = vpack.c.bf16 %v869_v8, %v868_v12  ;;  %896 = vst [vmem:[#allocation1] ss:$2 sm:$0xff] %v892_v10  ;;  %v901_v21 = vld.sshfl [vmem:[#allocation1 + $0x10] sm:$0xff pattern:$0x75316420] }
 0x25c   : > { %v906_v26 = vpack.c.bf16 %v901_v21, %v901_v21 }
 0x25d   : > { %882 = vrot.lane.b32.xlu0 %v879_v11, %s1322_s25  ;;  %v878_v16 = vrot.slane %v874_v13, 6 }
 0x25e   : > { %724 = vrot.lane.b32.xlu1 %v721_v15, %s1323_s26 }
 0x25f   : > { %880 = vrot.lane.b32.xlu2 %v878_v16, %s1322_s25  ;;  %s242_s25 = scalar_lea.vmem [#allocation7], %s1102_s11 }
 0x262   : > { %v899_v23 = vld.sshfl [vmem:[#allocation1] sm:$0xff pattern:$0x75316420]  ;;  %v900_v24 = vld.sshfl [vmem:[#allocation1 + $0x8] sm:$0xff pattern:$0x75316420] }
 0x263   : > { %993 = vst [vmem:[#allocation1] ss:$2 sm:$0xff] %v1462_v14  ;;  %v905_v17 = vpack.c.bf16 %v900_v24, %v899_v23  ;;  %v777_v14 = vpack.c.bf16 %v1620_v55, %v1620_v55 }
 0x265   : > { %911 = vrot.lane.b32.xlu0 %v906_v26, %s1316_s29  ;;  %v781_v32 = vrot.slane %v777_v14, 6 }
 0x266   : > { %782 = vrot.lane.b32.xlu1 %v780_v20, %s1320_s17 }
 0x267   : > { %909 = vrot.lane.b32.xlu2 %v905_v17, %s1316_s29 }
 0x26d   : > { %722 = vrot.lane.b32.xlu0 %v720_v28, %s1323_s26  ;;  %s1022_s26 = sshll.u32 %s242_s25, 4  ;;  %s1023_s26 = int_to_ptr.vmem [resolvable:$true] %s1022_s26 }
 0x26f   : > { %751 = vrot.lane.b32.xlu2 %v747_v29, %s1318_s15 }
 0x275   : > { %753 = vrot.lane.b32.xlu0 %v748_v30, %s1318_s15  ;;  %s1158_s15 = sshll.u32 %s1376_s22, 3  ;;  %s1009_s22 = scalar_lea.sflag [#allocation6], %s1441_s7 }
 0x276   : > { %s1020_s23 = scalar_lea.hbm %s1721_s5, %s1158_s15 }
 0x277   : > { %784 = vrot.lane.b32.xlu2 %v781_v32, %s1320_s17  ;;  %s1024_s8 = sshll.u32 %s1020_s23, 4  ;;  %s1025_s8 = int_to_ptr.hbm [resolvable:$true] %s1024_s8 }
 0x278   : > { %s1261_s28 = sshra.s32 %s1025_s8, 4  ;;  %s1262_s28 = int_to_ptr.hbm [resolvable:$true] %s1261_s28 }
 0x279   : > { %s1263_s9 = scalar_lea.hbm %s1262_s28, 8  ;;  %p1268_p0 = scmp.lt.s32.totalorder %s1262_s28, %s1721_s5 }
 0x27a   : > { %p1264_p6 = scmp.ne.s32.totalorder %s1262_s28, %s1263_s9  ;;  %p1269_p1 = scmp.lt.s32.totalorder %s1267_s12, %s1263_s9 }
 0x27c   : > { %p1265_p9 = pnand %p1264_p6, %p1405_p11  ;;  %p1270_p3 = por %p1269_p1, %p1268_p0 }
 0x27d   : > { %928 = vperm.xlu0 %1216, %v925_v2  }
 0x27e   : > { %p1266_p13 = pneg %p1265_p9 }
 0x280   : > { %v696_v33 = vpop.permute.xlu2 %695  ;;  %p1271_p4 = pnand %p1270_p3, %p1266_p13 }
 0x281   : > { %v698_v38 = vrot.slane %v696_v33, 4 }
 0x297   : > { %v694_v34 = vpop.permute.xlu1 %693 }
 0x298   : > { %v697_v39 = vrot.slane %v694_v34, 4 }
 0x29a   : > { %v699_v19 = vsel %vm292_vm3, %v697_v39, %v698_v38 }
 0x29b   : > { %v700_v18 = vsel %vm326_vm10, %v694_v34, %v699_v19  ;;  %v919_v19 = vld [vmem:[%s1719_s3] sm:$0x3] }
 0x29c   : > { %702 = vst [vmem:[#allocation3] sm:$0x33] %v700_v18 }
 0x2a2   : > { %v825_v41 = vpop.permute.xlu2 %824 }
 0x2a3   : > { %v827_v25 = vrot.slane %v825_v41, 4 }
 0x2b9   : > { %v881_v42 = vpop.permute.xlu2 %880 }
 0x2ba   : > { %v884_v58 = vrot.slane %v881_v42, 4 }
 0x2c0   : > { %v854_v43 = vpop.permute.xlu1 %853 }
 0x2c1   : > { %v910_v48 = vpop.permute.xlu2 %909  ;;  %v856_v50 = vrot.slane %v854_v43, 4 }
 0x2c2   : > { %v913_v62 = vrot.slane %v910_v48, 4 }
 0x2c7   : > { %v852_v49 = vpop.permute.xlu0 %851 }
 0x2c8   : > { %v855_v51 = vrot.slane %v852_v49, 4  ;;  %v823_v36 = vpop.permute.xlu1 %822 }
 0x2c9   : > { %v826_v31 = vrot.slane %v823_v36, 4  ;;  %v752_v35 = vpop.permute.xlu2 %751 }
 0x2ca   : > { %v857_v37 = vsel %vm292_vm3, %v855_v51, %v856_v50  ;;  %v755_v21 = vrot.slane %v752_v35, 4 }
 0x2cb   : > { %v858_v52 = vsel %vm369_vm6, %v852_v49, %v857_v37  ;;  %v828_v55 = vsel %vm292_vm3, %v826_v31, %v827_v25 }
 0x2cc   : > { %860 = vst [vmem:[#allocation3 + $0x18] sm:$0x33] %v858_v52  ;;  %v829_v40 = vsel %vm406_vm7, %v823_v36, %v828_v55 }
 0x2cd   : > { %831 = vst [vmem:[#allocation3 + $0x10] sm:$0xcc] %v829_v40 }
 0x2cf   : > { %v883_v57 = vpop.permute.xlu0 %882 }
 0x2d0   : > { %v885_v44 = vrot.slane %v883_v57, 4  ;;  %v725_v45 = vpop.permute.xlu1 %724 }
 0x2d1   : > { %v785_v47 = vpop.permute.xlu2 %784  ;;  %v727_v59 = vrot.slane %v725_v45, 4 }
 0x2d2   : > { %v886_v53 = vsel %vm292_vm3, %v884_v58, %v885_v44  ;;  %v787_v56 = vrot.slane %v785_v47, 4 }
 0x2d3   : > { %v887_v46 = vsel %vm551_vm11, %v881_v42, %v886_v53  ;;  %v994_v42 = vld.sshfl [vmem:[#allocation1] sm:$0xff pattern:$0x75316420] }
 0x2d4   : > { %889 = vst [vmem:[#allocation3 + $0x18] sm:$0xcc] %v887_v46  ;;  %v1136_v17 = vld [vmem:[#allocation3 + $0x10] sm:$0xf]  ;;  %v1156_v27 = vld [vmem:[#allocation3 + $0x14] sm:$0xf] }
 0x2d7   : > { %v912_v61 = vpop.permute.xlu0 %911 }
 0x2d8   : > { %v914_v0 = vrot.slane %v912_v61, 4  ;;  %v783_v1 = vpop.permute.xlu1 %782 }
 0x2d9   : > { %v786_v54 = vrot.slane %v783_v1, 4 }
 0x2da   : > { %v915_v3 = vsel %vm292_vm3, %v913_v62, %v914_v0 }
 0x2db   : > { %v916_v4 = vsel %vm297_vm5, %v910_v48, %v915_v3  ;;  %v788_v5 = vsel %vm292_vm3, %v786_v54, %v787_v56  ;;  %v1157_v16 = vld [vmem:[#allocation3 + $0x14] sm:$0xf0]  ;;  %v1138_v26 = vld [vmem:[#allocation3 + $0x18] sm:$0xf0] }
 0x2dc   : > { %918 = vst [vmem:[#allocation3 + $0x20] sm:$0x33] %v916_v4  ;;  %v789_v6 = vsel %vm436_vm8, %v783_v1, %v788_v5  ;;  %v1137_v29 = vor.u32 %v1157_v16, %v1136_v17  ;;  %v1141_v14 = vor.u32 %v1156_v27, %v1138_v26  ;;  %v995_v48 = vld.sshfl [vmem:[#allocation1 + $0x8] sm:$0xff pattern:$0x75316420] }
 0x2dd   : > { %791 = vst [vmem:[#allocation3 + $0x8] sm:$0xcc] %v789_v6 }
 0x2df   : > { %v723_v7 = vpop.permute.xlu0 %722 }
 0x2e0   : > { %v726_v60 = vrot.slane %v723_v7, 4 }
 0x2e2   : > { %v728_v63 = vsel %vm292_vm3, %v726_v60, %v727_v59 }
 0x2e3   : > { %v729_v9 = vsel %vm356_vm12, %v723_v7, %v728_v63  ;;  %v924_v10 = vld [vmem:[#allocation3 + $0x20] sm:$0x33] }
 0x2e4   : > { %731 = vst [vmem:[#allocation3] sm:$0xcc] %v729_v9  ;;  %v944_v11 = vunpack.c.l.b16 %v924_v10  ;;  %v945_v12 = vunpack.c.h.b16 %v924_v10 }
 0x2e6   : > { %v950_v8 = vpack.c.b16 %v944_v11, %v944_v11  ;;  %v951_v13 = vpack.c.b16 %v945_v12, %v945_v12 }
 0x2e7   : > { %v754_v15 = vpop.permute.xlu0 %753 }
 0x2e8   : > { %v756_v22 = vrot.slane %v754_v15, 4  ;;  %v960_v23 = vsel %vm633_vm13, %v950_v8, 0  ;;  %v963_v24 = vsel %vm633_vm13, %v951_v13, 0 }
 0x2e9   : > { %970 = vmatpush.bf16.msra.mxu2 %v960_v23  ;;  %983 = vmatpush.bf16.msra.mxu3 %v963_v24 }
 0x2ea   : > { %v757_v20 = vsel %vm292_vm3, %v755_v21, %v756_v22 }
 0x2eb   : > { %v758_v28 = vsel %vm397_vm9, %v752_v35, %v757_v20  ;;  %v1128_v30 = vld [vmem:[#allocation3] sm:$0xf]  ;;  %v1154_v33 = vld [vmem:[#allocation3 + $0x4] sm:$0xf] }
 0x2ec   : > { %760 = vst [vmem:[#allocation3 + $0x8] sm:$0x33] %v758_v28 }
 0x2ed   : > { %971 = vmatpush.bf16.msra.mxu2 %v1137_v29  ;;  %984 = vmatpush.bf16.msra.mxu3 %v1141_v14 }
 0x2ef   : > { %v929_v18 = vpop.permute.xlu0 %928 }
 0x2f3   : > { %v1155_v32 = vld [vmem:[#allocation3 + $0x4] sm:$0xf0]  ;;  %v1130_v34 = vld [vmem:[#allocation3 + $0x8] sm:$0xf0] }
 0x2f4   : > { %v1129_v38 = vor.u32 %v1155_v32, %v1128_v30  ;;  %v1133_v39 = vor.u32 %v1154_v33, %v1130_v34 }
 0x2f6   : > { %972 = vmatpush.bf16.msra.mxu2 %v1129_v38  ;;  %985 = vmatpush.bf16.msra.mxu3 %v1133_v39 }
 0x2f9   : > { %1142 = vmatmul.msk.bf16.vlgmr.msra.gmra.mxu2 %vm629_vm14, %v919_v19  ;;  %1143 = vmatmul.msk.bf16.vlgmr.msra.gmra.mxu3 %vm629_vm14, %v919_v19 }
 0x37c   : > { %v974_v41 = vpop.f32.mrf.mxu2  ;;  %v987_v43 = vpop.f32.mrf.mxu3 }
 0x37d   : > { %v975_v49 = vadd.f32 %v974_v41, %v929_v18  ;;  %v988_v50 = vadd.f32 %v987_v43, %v929_v18 }
 0x37f   : > { %v998_v51 = vadd.f32 %v994_v42, %v975_v49  ;;  %v999_v36 = vadd.f32 %v995_v48, %v988_v50 }
 0x381   : > { %v1001_v25 = vmax.f32 %v999_v36, 0.0  ;;  %v1000_v31 = vmax.f32 %v998_v51, 0.0 }
 0x383   : > { %v1004_v37 = vrot.slane %v1001_v25, 4 }
 0x384   : > { %v976_v52 = vpop.f32.mrf.mxu2  ;;  %v989_v55 = vpop.f32.mrf.mxu3 }
 0x385   : > { %v1005_v40 = vsel %vm292_vm3, %v1000_v31, %v1004_v37 }
 0x386   : > { %1007 = vst [vmem:[%s242_s25] sm:$0xff] %v1005_v40 }
 0x387   : > { %1274 = shalt.err (!%p1271_p4)
}
 0x388   : > { %1161 = dma.vmem_to_hbm [thread:$0]  (%p1405_p11), %s1023_s26, 128, %s1025_s8, %s1009_s22  }
 0x389 PF: > { %s1036_s7 = sand.u32 1, %s1301_s18   ;;  %p1727_p7 = scmp.ge.s32.totalorder %s1313_s21, 2 }
 0x38a   : > { %s1037_s13 = scalar_lea.sflag [#allocation6], %s1036_s7 }
 0x38b   : > { %p1168_p5 = pnand %p1727_p7, %p1409_p12 }
 0x38d   : > { %p1169_p8 = pneg %p1168_p5 }
 0x38f   : > { %1296 = dma.done.wait (%p1169_p8), %s1037_s13, 128  }
 0x390   : > { %1298 = vsyncadd (%p1169_p8), %s1037_s13, 4294967168  ;;  %p18_p10 = scmp.ge.s32.totalorder %s1380_s24, 4   ;;  %s1728_s18 = smov %s1305_s19 }
 0x391   : > { %s1729_s19 = smov %s1309_s20  ;;  %s1730_s20 = smov %s1392_s27 }
 0x392   : > { %s1731_s21 = smov %s1380_s24  ;;  %20 = sbr.rel (!%p18_p10) target bundleno = 5 (0x5), region = 101 }
 0x397   :  { %1043 = vsyncpa [#allocation5], 1 }
 0x398   :  { %1045 = vsyncpa [#allocation5 + $0x1], 1 }
 0x399   :  { %1046 = vsyncpa [#allocation6], 1 }
 0x39a   :  { %1048 = vsyncpa [#allocation6 + $0x1], 1 }

</bundles_post_ra>
